<compile_context>
chip_gen: v5e
topology: v5e:2x2
jax: 0.10.0
libtpu: 0.0.40
codegen_flags: <defaults>
</compile_context>

<pallas_src>
import functools

import jax
import jax.numpy as jnp
from jax.experimental import pallas as pl
from jax.experimental.pallas import tpu as pltpu

LANE = 128
SUBLANE = 8
# ~1 MiB (f32) per input block in the tiled path.
TARGET_BLOCK_ELEMS = 2048 * LANE
# Problems up to this many elements run as one fused, grid-less block
# (3 x 1 MiB f32 resident in VMEM at the limit).
SMALL_MAX_ELEMS = 256 * 1024


def _wmse_small_kernel(*refs, inv_n, has_w):
    """Whole problem in one VMEM block: fused weighted-SSE + mean -> SMEM."""
    if has_w:
        w_ref, x_ref, t_ref, o_ref = refs
    else:
        x_ref, t_ref, o_ref = refs
    x = x_ref[...].astype(jnp.float32)
    t = t_ref[...].astype(jnp.float32)
    d = x - t
    p = d * d
    if has_w:
        p = w_ref[...].astype(jnp.float32) * p
    # Reduce leading (register-parallel) axes first with pure VPU adds, so
    # Mosaic only ever sees a rank-2 cross-lane reduction at the end.
    if p.ndim > 2:
        p = jnp.sum(p, axis=tuple(range(p.ndim - 2)))
    elif p.ndim < 2:
        p = p.reshape((1,) * (2 - p.ndim) + p.shape)
    o_ref[0, 0] = jnp.sum(p) * jnp.float32(inv_n)


def _wmse_tiled_kernel(*refs, block_rows, cols, total_rows, inv_n, has_w):
    """Grid-tiled partial sums of weight * (x - t)^2 with an (8, cols) acc."""
    if has_w:
        w_ref, x_ref, t_ref, o_ref, acc_ref = refs
    else:
        x_ref, t_ref, o_ref, acc_ref = refs
    k = pl.program_id(0)

    @pl.when(k == 0)
    def _():
        acc_ref[...] = jnp.zeros_like(acc_ref)

    x = x_ref[...].astype(jnp.float32)
    t = t_ref[...].astype(jnp.float32)
    d = x - t
    p = d * d
    if has_w:
        p = w_ref[...].astype(jnp.float32) * p

    if total_rows % block_rows != 0:
        # Rows of the final (boundary) block past the true row count hold
        # unspecified data; select them away.  Cheap VPU ops, and elided at
        # trace time whenever the grid divides evenly.
        row_ids = jax.lax.broadcasted_iota(jnp.int32, (block_rows, cols), 0)
        valid = total_rows - k * block_rows
        p = jnp.where(row_ids < valid, p, 0.0)

    # Fold this step's product into a single (8, cols) vreg group with pure
    # elementwise VPU adds; the one cross-lane XLU reduce runs at finalize.
    acc_ref[...] += p.reshape(block_rows // SUBLANE, SUBLANE, cols).sum(axis=0)

    @pl.when(k == pl.num_programs(0) - 1)
    def _():
        o_ref[0, 0] = jnp.sum(acc_ref[...]) * jnp.float32(inv_n)


def custom_loss(weight, inputs, target):
    """Pallas implementation of mean(weight * (inputs - target) ** 2)."""
    assert inputs.shape == target.shape
    total = int(inputs.size)
    inv_n = 1.0 / float(total)

    w = jnp.asarray(weight)  # keep weight in its own dtype (no downcast)
    if w.size == 1:
        w_arr = None  # scalar weight: fold in after the kernel
        w_scalar = w.reshape(()).astype(jnp.float32)
    elif w.shape == inputs.shape:
        w_arr, w_scalar = w, None
    else:
        # TODO(synk): low-rank broadcastable weights could stay small and be
        # broadcast inside the kernel; materialize as a fallback for now.
        w_arr, w_scalar = jnp.broadcast_to(w, inputs.shape), None

    smem_out = pl.BlockSpec(memory_space=pltpu.MemorySpace.SMEM)

    if total <= SMALL_MAX_ELEMS:
        # Small problem: original ND shape straight into VMEM -- no reshape,
        # no pad, no grid, no accumulator.
        operands = [a for a in (w_arr, inputs, target) if a is not None]
        vmem = pl.BlockSpec(memory_space=pltpu.MemorySpace.VMEM)
        out = pl.pallas_call(
            functools.partial(_wmse_small_kernel, inv_n=inv_n,
                              has_w=w_arr is not None),
            out_shape=jax.ShapeDtypeStruct((1, 1), jnp.float32),
            in_specs=[vmem] * len(operands),
            out_specs=smem_out,
        )(*operands)
        loss = out[0, 0]
    else:
        # Large problem: layout-preserving 2-D collapse (never padded).
        if total % LANE == 0:
            rows, cols = total // LANE, LANE          # lane-dense slab
        else:
            cols = inputs.shape[-1] if inputs.ndim else 1
            rows = total // cols                      # native trailing dim
        x2 = inputs.reshape(rows, cols)
        t2 = target.reshape(rows, cols)
        w2 = w_arr.reshape(rows, cols) if w_arr is not None else None

        target_rows = max(SUBLANE,
                          (TARGET_BLOCK_ELEMS // cols) // SUBLANE * SUBLANE)
        block_rows = min(target_rows,
                         ((rows + SUBLANE - 1) // SUBLANE) * SUBLANE)
        steps = -(-rows // block_rows)

        operands = [a for a in (w2, x2, t2) if a is not None]
        tile = pl.BlockSpec((block_rows, cols), lambda k: (k, 0))
        out = pl.pallas_call(
            functools.partial(_wmse_tiled_kernel, block_rows=block_rows,
                              cols=cols, total_rows=rows, inv_n=inv_n,
                              has_w=w2 is not None),
            out_shape=jax.ShapeDtypeStruct((1, 1), jnp.float32),
            grid=(steps,),
            in_specs=[tile] * len(operands),
            out_specs=smem_out,
            scratch_shapes=[pltpu.VMEM((SUBLANE, cols), jnp.float32)],
            compiler_params=pltpu.CompilerParams(
                dimension_semantics=("arbitrary",),   # sequential reduction
            ),
        )(*operands)
        loss = out[0, 0]

    if w_scalar is not None:
        loss = loss * w_scalar
    return loss


if __name__ == "__main__":
    key = jax.random.PRNGKey(0)
    keys = jax.random.split(key, 6)

    def ref_loss(w, x, t):
        return jnp.mean(jnp.asarray(w, jnp.float32) * (x - t) ** 2)

    # --- primary case: the PyTorch module's example shape (small path) -----
    shape = (2, 4, 16, 16)
    x = jax.random.normal(keys[0], shape, dtype=jnp.float32)
    t = jax.random.normal(keys[1], shape, dtype=jnp.float32)
    w = ((jnp.arange(x.size, dtype=jnp.float32).reshape(shape) % 7) + 1.0) / 7.0
    loss = custom_loss(w, x, t)
    jax.block_until_ready(loss)
    ref = ref_loss(w, x, t)
    assert jnp.allclose(loss, ref, rtol=1e-6, atol=1e-6), (loss, ref)

    # --- scalar weight: weight never materialized to full shape ------------
    loss_s = custom_loss(0.37, x, t)
    jax.block_until_ready(loss_s)
    ref_s = ref_loss(0.37, x, t)
    assert jnp.allclose(loss_s, ref_s, rtol=1e-6, atol=1e-6), (loss_s, ref_s)

    # --- larger case: tiled path, 2 grid steps, final block row-masked -----
    shape_big = (5, 8, 64, 128)   # 327680 elems -> (2560, 128), block 2048
    xb = jax.random.normal(keys[2], shape_big, dtype=jnp.float32)
    tb = jax.random.normal(keys[3], shape_big, dtype=jnp.float32)
    wb = ((jnp.arange(xb.size, dtype=jnp.float32).reshape(shape_big) % 5) + 1.0) / 5.0
    loss_b = custom_loss(wb, xb, tb)
    jax.block_until_ready(loss_b)
    ref_b = ref_loss(wb, xb, tb)
    assert jnp.allclose(loss_b, ref_b, rtol=1e-5, atol=1e-6), (loss_b, ref_b)

    # --- ragged case: odd shape, no pad anywhere (small path, ND block) ----
    shape_odd = (3, 5, 17, 19)    # 4845 elems, not a multiple of 128
    xo = jax.random.normal(keys[4], shape_odd, dtype=jnp.float32)
    to = jax.random.normal(keys[5], shape_odd, dtype=jnp.float32)
    wo = ((jnp.arange(xo.size, dtype=jnp.float32).reshape(shape_odd) % 3) + 1.0) / 3.0
    loss_o = custom_loss(wo, xo, to)
    jax.block_until_ready(loss_o)
    ref_o = ref_loss(wo, xo, to)
    assert jnp.allclose(loss_o, ref_o, rtol=1e-5, atol=1e-6), (loss_o, ref_o)

    print("KERNEL_OK")
</pallas_src>

<mosaic_0001>
module attributes {stable_mosaic.version = 11 : i64} {
  func.func @_wmse_small_kernel(%arg0: memref<2x4x16x16xf32, #tpu.memory_space<vmem>>, %arg1: memref<2x4x16x16xf32, #tpu.memory_space<vmem>>, %arg2: memref<2x4x16x16xf32, #tpu.memory_space<vmem>>, %arg3: memref<1x1xf32, #tpu.memory_space<smem>>) attributes {dimension_semantics = [], scalar_prefetch = 0 : i64, scratch_operands = 0 : i64, tpu.core_type = #tpu.core_type<tc>} {
    %c0 = arith.constant 0 : index
    %c0_0 = arith.constant 0 : index
    %c0_1 = arith.constant 0 : index
    %c0_2 = arith.constant 0 : index
    %0 = vector.load %arg1[%c0, %c0_0, %c0_1, %c0_2] : memref<2x4x16x16xf32, #tpu.memory_space<vmem>>, vector<2x4x16x16xf32>
    %c0_3 = arith.constant 0 : index
    %c0_4 = arith.constant 0 : index
    %c0_5 = arith.constant 0 : index
    %c0_6 = arith.constant 0 : index
    %1 = vector.load %arg2[%c0_3, %c0_4, %c0_5, %c0_6] : memref<2x4x16x16xf32, #tpu.memory_space<vmem>>, vector<2x4x16x16xf32>
    %2 = arith.subf %0, %1 : vector<2x4x16x16xf32>
    %3 = arith.mulf %2, %2 : vector<2x4x16x16xf32>
    %c0_7 = arith.constant 0 : index
    %c0_8 = arith.constant 0 : index
    %c0_9 = arith.constant 0 : index
    %c0_10 = arith.constant 0 : index
    %4 = vector.load %arg0[%c0_7, %c0_8, %c0_9, %c0_10] : memref<2x4x16x16xf32, #tpu.memory_space<vmem>>, vector<2x4x16x16xf32>
    %5 = arith.mulf %4, %3 : vector<2x4x16x16xf32>
    %cst = arith.constant dense<0.000000e+00> : vector<16x16xf32>
    %6 = vector.multi_reduction <add>, %5, %cst [0, 1] : vector<2x4x16x16xf32> to vector<16x16xf32>
    %7 = vector.shape_cast %6 : vector<16x16xf32> to vector<1x16x16xf32>
    %cst_11 = arith.constant dense<0.000000e+00> : vector<1xf32>
    %8 = vector.multi_reduction <add>, %7, %cst_11 [1, 2] : vector<1x16x16xf32> to vector<1xf32>
    %9 = vector.shape_cast %8 : vector<1xf32> to vector<1x1x1xf32>
    %10 = vector.extract %9[0, 0, 0] : f32 from vector<1x1x1xf32>
    %cst_12 = arith.constant 4.8828125E-4 : f32
    %11 = arith.mulf %10, %cst_12 : f32
    %c0_13 = arith.constant 0 : index
    %c0_14 = arith.constant 0 : index
    %12 = memref.load %arg3[%c0_13, %c0_14] : memref<1x1xf32, #tpu.memory_space<smem>>
    memref.store %11, %arg3[%c0_13, %c0_14] : memref<1x1xf32, #tpu.memory_space<smem>>
    return
  }
}

</mosaic_0001>

<bundles_post_ra>
// kernel: tpu_custom_call.1
= control target key start
LH: loop header
LB: loop body
LE: loop exit
PB: predicated region body
PF: predicated region fallthrough
CT: control target
= control target key end

     0   :  { %8 = vsyncpa [#allocation3], 0  ;;  %s375_s0 = inlined_call_operand.hbm [shape: f32[2,4,16,16], index: 0, kind: input, shape index: {}]   ;;  %s376_s1 = inlined_call_operand.hbm [shape: f32[2,4,16,16], index: 1, kind: input, shape index: {}]   ;;  %s377_s2 = inlined_call_operand.hbm [shape: f32[2,4,16,16], index: 2, kind: input, shape index: {}]   ;;  %s378_s3 = inlined_call_operand.hbm [shape: f32[1,1], index: 3, kind: output, shape index: {}]  }
   0x1   :  { %9 = vsyncpa [#allocation6], 0 }
   0x2   :  { %10 = vsyncpa [#allocation4], 0  ;;  %s28_s14 = sshll.u32 %s376_s1, 4  ;;  %s319_s15 = smov [#allocation5]   ;;  %s29_s14 = int_to_ptr.hbm [resolvable:$true] %s28_s14 }
   0x3   :  { %s30_s16 = sshll.u32 %s319_s15, 4  ;;  %s15_s19 = sshll.u32 %s375_s0, 4  ;;  %s31_s16 = int_to_ptr.vmem [resolvable:$true] %s30_s16  ;;  %s16_s19 = int_to_ptr.hbm [resolvable:$true] %s15_s19 }
   0x4   :  { %s320_s20 = smov 128   ;;  %s321_s21 = smov 8  }
   0x5   :  { %36 = dma.hbm_to_vmem [thread:$0]  %s29_s14, 2048, %s31_s16, [#allocation6], %s320_s20, %s320_s20, %s321_s21  }
   0x6   :  { %s322_s22 = smov [#allocation2]   ;;  %s41_s26 = sshll.u32 %s377_s2, 4  ;;  %s42_s26 = int_to_ptr.hbm [resolvable:$true] %s41_s26 }
   0x7   :  { %s17_s23 = sshll.u32 %s322_s22, 4  ;;  %s323_s1 = smov [#allocation7]   ;;  %s18_s23 = int_to_ptr.vmem [resolvable:$true] %s17_s23 }
   0x8   :  { %23 = dma.hbm_to_vmem [thread:$0]  %s16_s19, 2048, %s18_s23, [#allocation3], %s320_s20, %s320_s20, %s321_s21  }
   0x9   :  { %s43_s27 = sshll.u32 %s323_s1, 4  ;;  %s44_s27 = int_to_ptr.vmem [resolvable:$true] %s43_s27 }
   0xa   :  { %49 = dma.hbm_to_vmem [thread:$0]  %s42_s26, 2048, %s44_s27, [#allocation6], %s320_s20, %s320_s20, %s321_s21  }
   0xb   :  { %313 = dma.done.wait [#allocation3], 2048  }
   0xc   :  { %314 = vsyncadd [#allocation3], 4294965248 }
   0xd   :  { %315 = dma.done.wait [#allocation6], 4096  }
   0xe   :  { %316 = vsyncadd [#allocation6], 4294963200  ;;  %v62_v0 = vld [vmem:[#allocation5] sm:$0xff]  ;;  %v64_v1 = vld [vmem:[#allocation5 + $0x10] sm:$0xff]  ;;  %vm158_vm0 = vcmask 130048   ;;  %s209_s28 = sshll.u32 %s378_s3, 4  ;;  %s210_s28 = int_to_ptr.hbm [resolvable:$true] %s209_s28 }
   0xf   :  { %v63_v2 = vld [vmem:[#allocation5 + $0x8] sm:$0xff]  ;;  %v65_v3 = vld [vmem:[#allocation5 + $0x18] sm:$0xff]  ;;  %v66_v4 = vld [vmem:[#allocation5 + $0x20] sm:$0xff]  ;;  %s324_s4 = smov [#allocation8]  }
  0x10   :  { %v67_v5 = vld [vmem:[#allocation5 + $0x28] sm:$0xff]  ;;  %v68_v6 = vld [vmem:[#allocation5 + $0x30] sm:$0xff]  ;;  %v78_v7 = vld [vmem:[#allocation7] sm:$0xff] }
  0x11   :  { %v79_v8 = vld [vmem:[#allocation7 + $0x8] sm:$0xff]  ;;  %v69_v9 = vld [vmem:[#allocation5 + $0x38] sm:$0xff]  ;;  %v70_v10 = vld [vmem:[#allocation5 + $0x40] sm:$0xff]  ;;  %v94_v14 = vsub.f32 %v62_v0, %v78_v7 }
  0x12   :  { %v80_v11 = vld [vmem:[#allocation7 + $0x10] sm:$0xff]  ;;  %v81_v12 = vld [vmem:[#allocation7 + $0x18] sm:$0xff]  ;;  %v82_v13 = vld [vmem:[#allocation7 + $0x20] sm:$0xff]  ;;  %v95_v26 = vsub.f32 %v63_v2, %v79_v8 }
  0x13   :  { %v71_v15 = vld [vmem:[#allocation5 + $0x48] sm:$0xff]  ;;  %v84_v17 = vld [vmem:[#allocation7 + $0x30] sm:$0xff]  ;;  %v96_v18 = vsub.f32 %v64_v1, %v80_v11  ;;  %v98_v19 = vsub.f32 %v66_v4, %v82_v13  ;;  %v85_v21 = vld [vmem:[#allocation7 + $0x38] sm:$0xff]  ;;  %v97_v27 = vsub.f32 %v65_v3, %v81_v12  ;;  %v110_v33 = vmul.f32 %v94_v14, %v94_v14 }
  0x14   :  { %v83_v16 = vld [vmem:[#allocation7 + $0x28] sm:$0xff]  ;;  %v72_v20 = vld [vmem:[#allocation5 + $0x50] sm:$0xff]  ;;  %v86_v22 = vld [vmem:[#allocation7 + $0x40] sm:$0xff]  ;;  %v100_v29 = vsub.f32 %v68_v6, %v84_v17  ;;  %v101_v37 = vsub.f32 %v69_v9, %v85_v21  ;;  %v111_v49 = vmul.f32 %v95_v26, %v95_v26 }
  0x15   :  { %v73_v23 = vld [vmem:[#allocation5 + $0x58] sm:$0xff]  ;;  %v87_v24 = vld [vmem:[#allocation7 + $0x48] sm:$0xff]  ;;  %v88_v25 = vld [vmem:[#allocation7 + $0x50] sm:$0xff]  ;;  %v99_v28 = vsub.f32 %v67_v5, %v83_v16  ;;  %v102_v38 = vsub.f32 %v70_v10, %v86_v22  ;;  %v112_v39 = vmul.f32 %v96_v18, %v96_v18  ;;  %v114_v40 = vmul.f32 %v98_v19, %v98_v19 }
  0x16   :  { %v74_v30 = vld [vmem:[#allocation5 + $0x60] sm:$0xff]  ;;  %v75_v31 = vld [vmem:[#allocation5 + $0x68] sm:$0xff]  ;;  %v89_v32 = vld [vmem:[#allocation7 + $0x58] sm:$0xff]  ;;  %v103_v43 = vsub.f32 %v71_v15, %v87_v24  ;;  %v104_v44 = vsub.f32 %v72_v20, %v88_v25  ;;  %v113_v50 = vmul.f32 %v97_v27, %v97_v27  ;;  %v116_v52 = vmul.f32 %v100_v29, %v100_v29 }
  0x17   :  { %v76_v34 = vld [vmem:[#allocation5 + $0x70] sm:$0xff]  ;;  %v90_v35 = vld [vmem:[#allocation7 + $0x60] sm:$0xff]  ;;  %v91_v36 = vld [vmem:[#allocation7 + $0x68] sm:$0xff]  ;;  %v115_v51 = vmul.f32 %v99_v28, %v99_v28  ;;  %v105_v54 = vsub.f32 %v73_v23, %v89_v32  ;;  %v117_v61 = vmul.f32 %v101_v37, %v101_v37  ;;  %v118_v62 = vmul.f32 %v102_v38, %v102_v38 }
  0x18   :  { %v126_v41 = vld [vmem:[#allocation2] sm:$0xff]  ;;  %v77_v42 = vld [vmem:[#allocation5 + $0x78] sm:$0xff]  ;;  %v128_v45 = vld [vmem:[#allocation2 + $0x10] sm:$0xff]  ;;  %v106_v55 = vsub.f32 %v74_v30, %v90_v35  ;;  %v107_v56 = vsub.f32 %v75_v31, %v91_v36  ;;  %v119_v3 = vmul.f32 %v103_v43, %v103_v43  ;;  %v120_v4 = vmul.f32 %v104_v44, %v104_v44 }
  0x19   :  { %v130_v46 = vld [vmem:[#allocation2 + $0x20] sm:$0xff]  ;;  %v92_v47 = vld [vmem:[#allocation7 + $0x70] sm:$0xff]  ;;  %v93_v48 = vld [vmem:[#allocation7 + $0x78] sm:$0xff]  ;;  %v142_v60 = vmul.f32 %v126_v41, %v110_v33  ;;  %v144_v63 = vmul.f32 %v128_v45, %v112_v39  ;;  %v121_v13 = vmul.f32 %v105_v54, %v105_v54 }
  0x1a   :  { %v127_v53 = vld [vmem:[#allocation2 + $0x8] sm:$0xff]  ;;  %v129_v57 = vld [vmem:[#allocation2 + $0x18] sm:$0xff]  ;;  %v132_v59 = vld [vmem:[#allocation2 + $0x30] sm:$0xff]  ;;  %v146_v0 = vmul.f32 %v130_v46, %v114_v40  ;;  %v108_v1 = vsub.f32 %v76_v34, %v92_v47  ;;  %v109_v2 = vsub.f32 %v77_v42, %v93_v48  ;;  %v122_v14 = vmul.f32 %v106_v55, %v106_v55 }
  0x1b   :  { %v131_v58 = vld [vmem:[#allocation2 + $0x28] sm:$0xff]  ;;  %v133_v5 = vld [vmem:[#allocation2 + $0x38] sm:$0xff]  ;;  %v134_v6 = vld [vmem:[#allocation2 + $0x40] sm:$0xff]  ;;  %v143_v9 = vmul.f32 %v127_v53, %v111_v49  ;;  %v145_v10 = vmul.f32 %v129_v57, %v113_v50  ;;  %v148_v12 = vmul.f32 %v132_v59, %v116_v52  ;;  %v123_v15 = vmul.f32 %v107_v56, %v107_v56 }
  0x1c   :  { %v135_v7 = vld [vmem:[#allocation2 + $0x48] sm:$0xff]  ;;  %v136_v8 = vld [vmem:[#allocation2 + $0x50] sm:$0xff]  ;;  %v147_v11 = vmul.f32 %v131_v58, %v115_v51  ;;  %v159_v16 = vsel %vm158_vm0, %v142_v60, 0.0  ;;  %v149_v17 = vmul.f32 %v133_v5, %v117_v61  ;;  %v150_v18 = vmul.f32 %v134_v6, %v118_v62  ;;  %v137_v22 = vld [vmem:[#allocation2 + $0x58] sm:$0xff] }
  0x1d   :  { %v160_v19 = vsel %vm158_vm0, %v144_v63, 0.0  ;;  %v162_v20 = vsel %vm158_vm0, %v146_v0, 0.0  ;;  %v124_v21 = vmul.f32 %v108_v1, %v108_v1  ;;  %v138_v23 = vld [vmem:[#allocation2 + $0x60] sm:$0xff]  ;;  %v151_v24 = vmul.f32 %v135_v7, %v119_v3  ;;  %v139_v32 = vld [vmem:[#allocation2 + $0x68] sm:$0xff]  ;;  %v140_v33 = vld [vmem:[#allocation2 + $0x70] sm:$0xff] }
  0x1e   :  { %v152_v25 = vmul.f32 %v136_v8, %v120_v4  ;;  %v161_v26 = vadd.f32 %v160_v19, %v159_v16  ;;  %v164_v27 = vsel %vm158_vm0, %v148_v12, 0.0  ;;  %v174_v28 = vsel %vm158_vm0, %v143_v9, 0.0  ;;  %v141_v40 = vld [vmem:[#allocation2 + $0x78] sm:$0xff] }
  0x1f   :  { %v175_v29 = vsel %vm158_vm0, %v145_v10, 0.0  ;;  %v177_v30 = vsel %vm158_vm0, %v147_v11, 0.0  ;;  %v125_v31 = vmul.f32 %v109_v2, %v109_v2  ;;  %v153_v36 = vmul.f32 %v137_v22, %v121_v13 }
  0x20   :  { %v163_v34 = vadd.f32 %v162_v20, %v161_v26  ;;  %v176_v35 = vadd.f32 %v175_v29, %v174_v28  ;;  %v154_v37 = vmul.f32 %v138_v23, %v122_v14  ;;  %v166_v38 = vsel %vm158_vm0, %v150_v18, 0.0 }
  0x21   :  { %v179_v39 = vsel %vm158_vm0, %v149_v17, 0.0  ;;  %v155_v43 = vmul.f32 %v139_v32, %v123_v15  ;;  %v156_v44 = vmul.f32 %v140_v33, %v124_v21  ;;  %v168_v45 = vsel %vm158_vm0, %v152_v25, 0.0 }
  0x22   :  { %v165_v41 = vadd.f32 %v164_v27, %v163_v34  ;;  %v178_v42 = vadd.f32 %v177_v30, %v176_v35  ;;  %v181_v46 = vsel %vm158_vm0, %v151_v24, 0.0  ;;  %v157_v49 = vmul.f32 %v141_v40, %v125_v31 }
  0x23   :  { %v170_v50 = vsel %vm158_vm0, %v154_v37, 0.0  ;;  %v183_v51 = vsel %vm158_vm0, %v153_v36, 0.0  ;;  %v172_v54 = vsel %vm158_vm0, %v156_v44, 0.0  ;;  %v185_v55 = vsel %vm158_vm0, %v155_v43, 0.0 }
  0x24   :  { %v167_v47 = vadd.f32 %v166_v38, %v165_v41  ;;  %v180_v48 = vadd.f32 %v179_v39, %v178_v42  ;;  %v187_v58 = vsel %vm158_vm0, %v157_v49, 0.0 }
  0x26   :  { %v169_v52 = vadd.f32 %v168_v45, %v167_v47  ;;  %v182_v53 = vadd.f32 %v181_v46, %v180_v48 }
  0x28   :  { %v171_v56 = vadd.f32 %v170_v50, %v169_v52  ;;  %v184_v57 = vadd.f32 %v183_v51, %v182_v53 }
  0x2a   :  { %v173_v59 = vadd.f32 %v172_v54, %v171_v56  ;;  %v186_v60 = vadd.f32 %v185_v55, %v184_v57 }
  0x2c   :  { %v188_v61 = vadd.f32 %v187_v58, %v186_v60  ;;  %v189_v62 = vsel %vm158_vm0, %v173_v59, 0.0 }
  0x2e   :  { %v190_v63 = vsel %vm158_vm0, %v188_v61, 0.0 }
  0x2f   :  { %v191_v0 = vadd.f32 %v190_v63, %v189_v62 }
  0x31   :  { %192 = vadd.xlane.f32.xlu0 %v191_v0 }
  0xa4   :  { %v193_v1 = vpop.xlane.xlu0 %192 }
  0xa5   :  { %v194_v2 = vrot.slane %v193_v1, 4 }
  0xa7   :  { %v195_v3 = vadd.f32 %v194_v2, %v193_v1 }
  0xa9   :  { %v196_v4 = vrot.slane %v195_v3, 2 }
  0xab   :  { %v197_v5 = vadd.f32 %v196_v4, %v195_v3 }
  0xad   :  { %v198_v6 = vrot.slane %v197_v5, 1 }
  0xaf   :  { %v199_v7 = vadd.f32 %v198_v6, %v197_v5 }
  0xb1   :  { %221 = vpush %v199_v7 }
  0xe2   :  { %s222_s29 = spop %221 }
  0xe3   :  { %s201_s30 = smul.f32 0.00048828125, %s222_s29 }
  0xe5   :  { %203 = sst [smem:[#allocation8]] %s201_s30 }
  0xe6   :  { %212 = dma.smem_to_hbm %s324_s4, 16, %s210_s28, [#allocation4]  }
  0xe7   :  { %317 = dma.done.wait [#allocation4], 16  }
  0xe8   :  { %318 = vsyncadd [#allocation4], 4294967280 }
  0xe9   :  { %217 = sfence }
  0xea   :  { %218 = vsyncpa [#allocation3], 1 }
  0xeb   :  { %219 = vsyncpa [#allocation6], 1 }
  0xec   :  { %220 = vsyncpa [#allocation4], 1 }

</bundles_post_ra>
